<compile_context>
chip_gen: v7x
topology: tpu7x:2x2x1
jax: 0.10.0
libtpu: 0.0.40
codegen_flags: <defaults>
</compile_context>

<pallas_src>
import functools

import jax
import jax.numpy as jnp
from jax.experimental import pallas as pl
from jax.experimental.pallas import tpu as pltpu


BN_EPS = 1e-5


# ------------------------------------------------------------------
# Fused kernel
# ------------------------------------------------------------------
def _bn_affine(y_f32, gamma, beta, relu):
    """Training-mode BatchNorm1d (+optional ReLU) on an f32 pre-activation."""
    # y_f32: (B, N) f32;  gamma/beta: (1, N) f32.
    mean = jnp.mean(y_f32, axis=0, keepdims=True)
    diff = y_f32 - mean
    var = jnp.mean(diff * diff, axis=0, keepdims=True)
    # Fold gamma into the rsqrt scale -> one (1, N) multiply, not (B, N).
    scale = gamma * jax.lax.rsqrt(var + BN_EPS)
    out = diff * scale + beta
    if relu:
        out = jnp.maximum(out, 0.0)
    return out


def _fused_mlp_kernel(*refs, compute_dtype):
    # refs layout: x_ref, then (w, gamma, beta) per active layer, then o_ref.
    x_ref = refs[0]
    o_ref = refs[-1]
    layer_refs = refs[1:-1]
    n_layers = len(layer_refs) // 3

    h = x_ref[...]                                   # already compute_dtype
    for li in range(n_layers):
        w_ref, g_ref, be_ref = layer_refs[3 * li:3 * li + 3]
        y = jnp.dot(h.astype(compute_dtype), w_ref[...],
                    preferred_element_type=jnp.float32)
        # ReLU on every layer except the output fc (SimSiam projection head).
        h = _bn_affine(y, g_ref[...], be_ref[...], relu=(li < n_layers - 1))
    o_ref[...] = h.astype(o_ref.dtype)


# ------------------------------------------------------------------
# Host-side wrapper
# ------------------------------------------------------------------
def projection_mlp_forward(params, x, num_layers=3,
                           compute_dtype=jnp.bfloat16, out_dtype=None):
    """Fused Pallas forward pass mirroring projection_MLP.forward.

    BatchNorm uses batch statistics (training mode), matching a freshly
    constructed torch module in train().
    """
    if num_layers == 3:
        layer_names = ("layer1", "layer2", "layer3")
    elif num_layers == 2:
        layer_names = ("layer1", "layer3")
    else:
        raise Exception

    B, _ = x.shape
    out_dtype = out_dtype or x.dtype

    # Build kernel operands: bf16 matmul operands, f32 BN params as (1, N).
    # NOTE: the Linear bias is intentionally NOT passed — BN cancels it.
    args = [x.astype(compute_dtype)]
    for name in layer_names:
        p = params[name]
        args.append(p["w"].astype(compute_dtype))
        args.append(p["gamma"].reshape(1, -1).astype(jnp.float32))
        args.append(p["beta"].reshape(1, -1).astype(jnp.float32))

    out_dim = params[layer_names[-1]]["w"].shape[1]
    max_hidden = max(params[n]["w"].shape[1] for n in layer_names)

    # --- VMEM budget (everything resident at once; no grid => no double
    # buffering).  Intermediates live as f32 values (+ a bf16 cast copy).
    vmem_bytes = sum(int(a.size) * a.dtype.itemsize for a in args)
    vmem_bytes += B * out_dim * jnp.dtype(out_dtype).itemsize
    vmem_bytes += B * max_hidden * (4 + jnp.dtype(compute_dtype).itemsize) * 2
    budget = 48 * 1024 * 1024  # conservative for v7x's 64-MiB VMEM
    assert vmem_bytes < budget, (
        "projection_mlp_forward: operands do not fit the fused-VMEM budget; "
        "fall back to a K/feature-tiled per-layer kernel."
    )
    # TODO(synk): add a K-tiled (grid over reduction axis, 'arbitrary') fallback
    # for very large B*in_dim so the resident x block stays bounded on v7x.
    vmem_limit = None
    if vmem_bytes > 12 * 1024 * 1024:
        vmem_limit = min(int(vmem_bytes * 1.5) + (4 << 20), budget)

    kernel = functools.partial(_fused_mlp_kernel, compute_dtype=compute_dtype)
    vmem_spec = pl.BlockSpec(memory_space=pltpu.MemorySpace.VMEM)

    return pl.pallas_call(
        kernel,
        out_shape=jax.ShapeDtypeStruct((B, out_dim), out_dtype),
        in_specs=[vmem_spec] * len(args),
        out_specs=vmem_spec,
        compiler_params=pltpu.CompilerParams(vmem_limit_bytes=vmem_limit),
    )(*args)


# ------------------------------------------------------------------
# Parameter init (matches nn.Linear / nn.BatchNorm1d defaults)
# ------------------------------------------------------------------
def init_linear(key, in_dim, out_dim, dtype=jnp.float32):
    kw, kb = jax.random.split(key)
    bound = 1.0 / jnp.sqrt(in_dim)
    w = jax.random.uniform(kw, (in_dim, out_dim), dtype, -bound, bound)
    b = jax.random.uniform(kb, (out_dim,), dtype, -bound, bound)
    return w, b


def init_projection_mlp(key, in_dim, hidden_dim=512, out_dim=128):
    k1, k2, k3 = jax.random.split(key, 3)
    params = {}
    for name, k, (di, do) in (
        ("layer1", k1, (in_dim, hidden_dim)),
        ("layer2", k2, (hidden_dim, hidden_dim)),
        ("layer3", k3, (hidden_dim, out_dim)),
    ):
        w, b = init_linear(k, di, do)
        params[name] = {
            "w": w,
            "b": b,  # kept for fidelity to nn.Linear; unused (BN cancels it)
            "gamma": jnp.ones((do,), jnp.float32),
            "beta": jnp.zeros((do,), jnp.float32),
        }
    return params


# ------------------------------------------------------------------
# Pure-JAX reference (same bf16 matmul precision, bias INCLUDED to
# demonstrate numerically that BN cancels it)
# ------------------------------------------------------------------
def _ref_layer(x, p, relu, compute_dtype):
    y = jnp.dot(x.astype(compute_dtype), p["w"].astype(compute_dtype),
                preferred_element_type=jnp.float32)
    y = y + p["b"]
    mean = jnp.mean(y, axis=0, keepdims=True)
    var = jnp.mean((y - mean) ** 2, axis=0, keepdims=True)
    xhat = (y - mean) * jax.lax.rsqrt(var + BN_EPS)
    out = p["gamma"] * xhat + p["beta"]
    return jnp.maximum(out, 0.0) if relu else out


def _ref_forward(params, x, num_layers=3, compute_dtype=jnp.bfloat16):
    x = _ref_layer(x, params["layer1"], True, compute_dtype)
    if num_layers == 3:
        x = _ref_layer(x, params["layer2"], True, compute_dtype)
    x = _ref_layer(x, params["layer3"], False, compute_dtype)
    return x


if __name__ == "__main__":
    # Small, deterministic example: projection_MLP(in_dim=64, hidden_dim=256,
    # out_dim=128) applied to [B, in_dim].
    B, IN_DIM, HIDDEN, OUT = 16, 64, 256, 128

    key = jax.random.PRNGKey(0)
    kx, kp = jax.random.split(key)
    x = jax.random.normal(kx, (B, IN_DIM), jnp.float32)
    params = init_projection_mlp(kp, IN_DIM, HIDDEN, OUT)

    out = projection_mlp_forward(params, x, num_layers=3)
    out = jax.block_until_ready(out)

    ref = _ref_forward(params, x, num_layers=3)
    assert out.shape == (B, OUT)
    assert jnp.allclose(out.astype(jnp.float32), ref, atol=2e-2, rtol=2e-2), \
        "mismatch vs reference (3-layer)"

    # Also exercise and verify the num_layers == 2 path.
    out2 = jax.block_until_ready(projection_mlp_forward(params, x, num_layers=2))
    ref2 = _ref_forward(params, x, num_layers=2)
    assert out2.shape == (B, OUT)
    assert jnp.allclose(out2.astype(jnp.float32), ref2, atol=2e-2, rtol=2e-2), \
        "mismatch vs reference (2-layer)"

    print("KERNEL_OK")
</pallas_src>

<mosaic_0001>
module attributes {stable_mosaic.version = 11 : i64} {
  func.func @_fused_mlp_kernel(%arg0: memref<16x64xbf16, #tpu.memory_space<vmem>>, %arg1: memref<64x256xbf16, #tpu.memory_space<vmem>>, %arg2: memref<1x256xf32, #tpu.memory_space<vmem>>, %arg3: memref<1x256xf32, #tpu.memory_space<vmem>>, %arg4: memref<256x256xbf16, #tpu.memory_space<vmem>>, %arg5: memref<1x256xf32, #tpu.memory_space<vmem>>, %arg6: memref<1x256xf32, #tpu.memory_space<vmem>>, %arg7: memref<256x128xbf16, #tpu.memory_space<vmem>>, %arg8: memref<1x128xf32, #tpu.memory_space<vmem>>, %arg9: memref<1x128xf32, #tpu.memory_space<vmem>>, %arg10: memref<16x128xf32, #tpu.memory_space<vmem>>) attributes {dimension_semantics = [], scalar_prefetch = 0 : i64, scratch_operands = 0 : i64, tpu.core_type = #tpu.core_type<tc>} {
    %c0 = arith.constant 0 : index
    %c0_0 = arith.constant 0 : index
    %0 = vector.load %arg0[%c0, %c0_0] : memref<16x64xbf16, #tpu.memory_space<vmem>>, vector<16x64xbf16>
    %c0_1 = arith.constant 0 : index
    %c0_2 = arith.constant 0 : index
    %1 = vector.load %arg1[%c0_1, %c0_2] : memref<64x256xbf16, #tpu.memory_space<vmem>>, vector<64x256xbf16>
    %cst = arith.constant dense<0.000000e+00> : vector<16x256xf32>
    %2 = tpu.matmul %0, %1, %cst {dimension_numbers = #tpu.dot_dimension_numbers<[1], [0], [0], [1], [0, 0, 1, 1], [], []>} : vector<16x64xbf16>, vector<64x256xbf16>, vector<16x256xf32> -> vector<16x256xf32>
    %c0_3 = arith.constant 0 : index
    %c0_4 = arith.constant 0 : index
    %3 = vector.load %arg2[%c0_3, %c0_4] : memref<1x256xf32, #tpu.memory_space<vmem>>, vector<1x256xf32>
    %c0_5 = arith.constant 0 : index
    %c0_6 = arith.constant 0 : index
    %4 = vector.load %arg3[%c0_5, %c0_6] : memref<1x256xf32, #tpu.memory_space<vmem>>, vector<1x256xf32>
    %cst_7 = arith.constant dense<0.000000e+00> : vector<256xf32>
    %5 = vector.multi_reduction <add>, %2, %cst_7 [0] : vector<16x256xf32> to vector<256xf32>
    %6 = vector.shape_cast %5 : vector<256xf32> to vector<1x256xf32>
    %cst_8 = arith.constant 1.600000e+01 : f32
    %7 = vector.broadcast %cst_8 : f32 to vector<1x256xf32>
    %8 = arith.divf %6, %7 : vector<1x256xf32>
    %9 = vector.broadcast %8 : vector<1x256xf32> to vector<16x256xf32>
    %10 = arith.subf %2, %9 : vector<16x256xf32>
    %11 = arith.mulf %10, %10 : vector<16x256xf32>
    %cst_9 = arith.constant dense<0.000000e+00> : vector<256xf32>
    %12 = vector.multi_reduction <add>, %11, %cst_9 [0] : vector<16x256xf32> to vector<256xf32>
    %13 = vector.shape_cast %12 : vector<256xf32> to vector<1x256xf32>
    %cst_10 = arith.constant 1.600000e+01 : f32
    %14 = vector.broadcast %cst_10 : f32 to vector<1x256xf32>
    %15 = arith.divf %13, %14 : vector<1x256xf32>
    %cst_11 = arith.constant 9.99999974E-6 : f32
    %16 = vector.broadcast %cst_11 : f32 to vector<1x256xf32>
    %17 = arith.addf %15, %16 : vector<1x256xf32>
    %18 = math.rsqrt %17 : vector<1x256xf32>
    %19 = arith.mulf %3, %18 : vector<1x256xf32>
    %20 = vector.broadcast %19 : vector<1x256xf32> to vector<16x256xf32>
    %21 = arith.mulf %10, %20 : vector<16x256xf32>
    %22 = vector.broadcast %4 : vector<1x256xf32> to vector<16x256xf32>
    %23 = arith.addf %21, %22 : vector<16x256xf32>
    %cst_12 = arith.constant 0.000000e+00 : f32
    %24 = vector.broadcast %cst_12 : f32 to vector<16x256xf32>
    %25 = arith.maximumf %23, %24 : vector<16x256xf32>
    %26 = arith.truncf %25 : vector<16x256xf32> to vector<16x256xbf16>
    %c0_13 = arith.constant 0 : index
    %c0_14 = arith.constant 0 : index
    %27 = vector.load %arg4[%c0_13, %c0_14] : memref<256x256xbf16, #tpu.memory_space<vmem>>, vector<256x256xbf16>
    %cst_15 = arith.constant dense<0.000000e+00> : vector<16x256xf32>
    %28 = tpu.matmul %26, %27, %cst_15 {dimension_numbers = #tpu.dot_dimension_numbers<[1], [0], [0], [1], [0, 0, 1, 1], [], []>} : vector<16x256xbf16>, vector<256x256xbf16>, vector<16x256xf32> -> vector<16x256xf32>
    %c0_16 = arith.constant 0 : index
    %c0_17 = arith.constant 0 : index
    %29 = vector.load %arg5[%c0_16, %c0_17] : memref<1x256xf32, #tpu.memory_space<vmem>>, vector<1x256xf32>
    %c0_18 = arith.constant 0 : index
    %c0_19 = arith.constant 0 : index
    %30 = vector.load %arg6[%c0_18, %c0_19] : memref<1x256xf32, #tpu.memory_space<vmem>>, vector<1x256xf32>
    %cst_20 = arith.constant dense<0.000000e+00> : vector<256xf32>
    %31 = vector.multi_reduction <add>, %28, %cst_20 [0] : vector<16x256xf32> to vector<256xf32>
    %32 = vector.shape_cast %31 : vector<256xf32> to vector<1x256xf32>
    %cst_21 = arith.constant 1.600000e+01 : f32
    %33 = vector.broadcast %cst_21 : f32 to vector<1x256xf32>
    %34 = arith.divf %32, %33 : vector<1x256xf32>
    %35 = vector.broadcast %34 : vector<1x256xf32> to vector<16x256xf32>
    %36 = arith.subf %28, %35 : vector<16x256xf32>
    %37 = arith.mulf %36, %36 : vector<16x256xf32>
    %cst_22 = arith.constant dense<0.000000e+00> : vector<256xf32>
    %38 = vector.multi_reduction <add>, %37, %cst_22 [0] : vector<16x256xf32> to vector<256xf32>
    %39 = vector.shape_cast %38 : vector<256xf32> to vector<1x256xf32>
    %cst_23 = arith.constant 1.600000e+01 : f32
    %40 = vector.broadcast %cst_23 : f32 to vector<1x256xf32>
    %41 = arith.divf %39, %40 : vector<1x256xf32>
    %cst_24 = arith.constant 9.99999974E-6 : f32
    %42 = vector.broadcast %cst_24 : f32 to vector<1x256xf32>
    %43 = arith.addf %41, %42 : vector<1x256xf32>
    %44 = math.rsqrt %43 : vector<1x256xf32>
    %45 = arith.mulf %29, %44 : vector<1x256xf32>
    %46 = vector.broadcast %45 : vector<1x256xf32> to vector<16x256xf32>
    %47 = arith.mulf %36, %46 : vector<16x256xf32>
    %48 = vector.broadcast %30 : vector<1x256xf32> to vector<16x256xf32>
    %49 = arith.addf %47, %48 : vector<16x256xf32>
    %cst_25 = arith.constant 0.000000e+00 : f32
    %50 = vector.broadcast %cst_25 : f32 to vector<16x256xf32>
    %51 = arith.maximumf %49, %50 : vector<16x256xf32>
    %52 = arith.truncf %51 : vector<16x256xf32> to vector<16x256xbf16>
    %c0_26 = arith.constant 0 : index
    %c0_27 = arith.constant 0 : index
    %53 = vector.load %arg7[%c0_26, %c0_27] : memref<256x128xbf16, #tpu.memory_space<vmem>>, vector<256x128xbf16>
    %cst_28 = arith.constant dense<0.000000e+00> : vector<16x128xf32>
    %54 = tpu.matmul %52, %53, %cst_28 {dimension_numbers = #tpu.dot_dimension_numbers<[1], [0], [0], [1], [0, 0, 1, 1], [], []>} : vector<16x256xbf16>, vector<256x128xbf16>, vector<16x128xf32> -> vector<16x128xf32>
    %c0_29 = arith.constant 0 : index
    %c0_30 = arith.constant 0 : index
    %55 = vector.load %arg8[%c0_29, %c0_30] : memref<1x128xf32, #tpu.memory_space<vmem>>, vector<1x128xf32>
    %c0_31 = arith.constant 0 : index
    %c0_32 = arith.constant 0 : index
    %56 = vector.load %arg9[%c0_31, %c0_32] : memref<1x128xf32, #tpu.memory_space<vmem>>, vector<1x128xf32>
    %cst_33 = arith.constant dense<0.000000e+00> : vector<128xf32>
    %57 = vector.multi_reduction <add>, %54, %cst_33 [0] : vector<16x128xf32> to vector<128xf32>
    %58 = vector.shape_cast %57 : vector<128xf32> to vector<1x128xf32>
    %cst_34 = arith.constant 1.600000e+01 : f32
    %59 = vector.broadcast %cst_34 : f32 to vector<1x128xf32>
    %60 = arith.divf %58, %59 : vector<1x128xf32>
    %61 = vector.broadcast %60 : vector<1x128xf32> to vector<16x128xf32>
    %62 = arith.subf %54, %61 : vector<16x128xf32>
    %63 = arith.mulf %62, %62 : vector<16x128xf32>
    %cst_35 = arith.constant dense<0.000000e+00> : vector<128xf32>
    %64 = vector.multi_reduction <add>, %63, %cst_35 [0] : vector<16x128xf32> to vector<128xf32>
    %65 = vector.shape_cast %64 : vector<128xf32> to vector<1x128xf32>
    %cst_36 = arith.constant 1.600000e+01 : f32
    %66 = vector.broadcast %cst_36 : f32 to vector<1x128xf32>
    %67 = arith.divf %65, %66 : vector<1x128xf32>
    %cst_37 = arith.constant 9.99999974E-6 : f32
    %68 = vector.broadcast %cst_37 : f32 to vector<1x128xf32>
    %69 = arith.addf %67, %68 : vector<1x128xf32>
    %70 = math.rsqrt %69 : vector<1x128xf32>
    %71 = arith.mulf %55, %70 : vector<1x128xf32>
    %72 = vector.broadcast %71 : vector<1x128xf32> to vector<16x128xf32>
    %73 = arith.mulf %62, %72 : vector<16x128xf32>
    %74 = vector.broadcast %56 : vector<1x128xf32> to vector<16x128xf32>
    %75 = arith.addf %73, %74 : vector<16x128xf32>
    %c0_38 = arith.constant 0 : index
    %c0_39 = arith.constant 0 : index
    %76 = vector.load %arg10[%c0_38, %c0_39] : memref<16x128xf32, #tpu.memory_space<vmem>>, vector<16x128xf32>
    tpu.vector_store %arg10[%c0_38, %c0_39], %75 {strides = array<i32>} : memref<16x128xf32, #tpu.memory_space<vmem>>, vector<16x128xf32>,
    return
  }
}

</mosaic_0001>

<bundles_post_ra>
// kernel: tpu_custom_call.1
= control target key start
LH: loop header
LB: loop body
LE: loop exit
PB: predicated region body
PF: predicated region fallthrough
CT: control target
= control target key end

     0   :  { %15 = vsyncpa [#allocation3], 0  ;;  %s1345_s0 = inlined_call_operand.hbm [shape: bf16[16,64], index: 0, kind: input, shape index: {}]   ;;  %s1346_s1 = inlined_call_operand.hbm [shape: bf16[64,256], index: 1, kind: input, shape index: {}]   ;;  %s1347_s2 = inlined_call_operand.vmem [shape: f32[1,256], index: 2, kind: input, shape index: {}]   ;;  %s1348_s3 = inlined_call_operand.vmem [shape: f32[1,256], index: 3, kind: input, shape index: {}]   ;;  %s1349_s4 = inlined_call_operand.hbm [shape: bf16[256,256], index: 4, kind: input, shape index: {}]   ;;  %s1350_s5 = inlined_call_operand.vmem [shape: f32[1,256], index: 5, kind: input, shape index: {}]   ;;  %s1351_s6 = inlined_call_operand.vmem [shape: f32[1,256], index: 6, kind: input, shape index: {}]   ;;  %s1352_s7 = inlined_call_operand.hbm [shape: bf16[256,128], index: 7, kind: input, shape index: {}]   ;;  %s1353_s8 = inlined_call_operand.vmem [shape: f32[1,128], index: 8, kind: input, shape index: {}]   ;;  %s1354_s9 = inlined_call_operand.vmem [shape: f32[1,128], index: 9, kind: input, shape index: {}]   ;;  %s1355_s10 = inlined_call_operand.hbm [shape: f32[16,128], index: 10, kind: output, shape index: {}]  }
   0x1   :  { %16 = vsyncpa [#allocation6], 0 }
   0x2   :  { %17 = vsyncpa [#allocation9], 0 }
   0x3   :  { %18 = vsyncpa [#allocation4], 0  ;;  %s1160_s13 = smov [#allocation5]   ;;  %s1042_s17 = scalar_lea.hbm %s1346_s1, 1024 }
   0x4   :  { %s36_s14 = sshll.u32 %s1160_s13, 4  ;;  %p1043_p0 = scmp.ne.s32.totalorder %s1346_s1, %s1042_s17  ;;  %s37_s14 = int_to_ptr.vmem [resolvable:$true] %s36_s14 }
   0x5   :  { %p1046_p1 = scmp.lt.u32.totalorder %s1042_s17, %s1346_s1 }
   0x7   :  { %p1048_p2 = pnand %p1046_p1, %p1043_p0 }
   0x9   :  { %1051 = shalt.err (!%p1048_p2)
}
   0xa   :  { %s1052_s22 = scalar_lea.vmem %s37_s14, 1024  ;;  %p1057_p4 = scmp.lt.s32.totalorder %s37_s14, %s37_s14 }
   0xb   :  { %p1053_p3 = scmp.ne.s32.totalorder %s37_s14, %s1052_s22  ;;  %p1058_p5 = scmp.lt.s32.totalorder %s1052_s22, %s1052_s22 }
   0xd   :  { %p1059_p6 = por %p1058_p5, %p1057_p4 }
   0xf   :  { %p1060_p7 = pnand %p1059_p6, %p1053_p3 }
  0x11   :  { %1063 = shalt.err (!%p1060_p7)
}
  0x12   :  { %s1161_s23 = smov 128   ;;  %s1162_s24 = smov 8  }
  0x13   :  { %42 = dma.hbm_to_vmem [thread:$0]  %s1346_s1, 1024, %s37_s14, [#allocation6], %s1161_s23, %s1161_s23, %s1162_s24  }
  0x14   :  { %s1163_s27 = smov [#allocation2]   ;;  %s1064_s11 = scalar_lea.hbm %s1345_s0, 128 }
  0x15   :  { %s24_s28 = sshll.u32 %s1163_s27, 4  ;;  %p1065_p8 = scmp.ne.s32.totalorder %s1345_s0, %s1064_s11  ;;  %s25_s28 = int_to_ptr.vmem [resolvable:$true] %s24_s28 }
  0x16   :  { %p1068_p9 = scmp.lt.u32.totalorder %s1064_s11, %s1345_s0 }
  0x18   :  { %p1070_p10 = pnand %p1068_p9, %p1065_p8 }
  0x1a   :  { %1073 = shalt.err (!%p1070_p10)
}
  0x1b   :  { %s1074_s17 = scalar_lea.vmem %s25_s28, 128  ;;  %p1079_p12 = scmp.lt.s32.totalorder %s25_s28, %s25_s28 }
  0x1c   :  { %p1075_p11 = scmp.ne.s32.totalorder %s25_s28, %s1074_s17  ;;  %p1080_p13 = scmp.lt.s32.totalorder %s1074_s17, %s1074_s17 }
  0x1e   :  { %p1081_p0 = por %p1080_p13, %p1079_p12 }
  0x20   :  { %p1082_p1 = pnand %p1081_p0, %p1075_p11 }
  0x22   :  { %1085 = shalt.err (!%p1082_p1)
}
  0x23   :  { %s1164_s1 = smov 64   ;;  %s1165_s14 = smov 4  }
  0x24   :  { %30 = dma.hbm_to_vmem [thread:$0]  %s1345_s0, 128, %s25_s28, [#allocation3], %s1164_s1, %s1164_s1, %s1165_s14  }
  0x25   :  { %s1166_s20 = smov [#allocation7]   ;;  %s1167_s22 = smov [#allocation8]  }
  0x26   :  { %s52_s21 = sshll.u32 %s1166_s20, 4  ;;  %s68_s25 = sshll.u32 %s1167_s22, 4  ;;  %s53_s21 = int_to_ptr.vmem [resolvable:$true] %s52_s21  ;;  %s1256_s25 = int_to_ptr.vmem [resolvable:$true] %s68_s25 }
  0x27   :  { %s1086_s29 = scalar_lea.hbm %s1349_s4, 4096 }
  0x28   :  { %p1087_p2 = scmp.ne.s32.totalorder %s1349_s4, %s1086_s29  ;;  %p1090_p3 = scmp.lt.u32.totalorder %s1086_s29, %s1349_s4 }
  0x2a   :  { %p1092_p4 = pnand %p1090_p3, %p1087_p2 }
  0x2c   :  { %1095 = shalt.err (!%p1092_p4)
}
  0x2d   :  { %s1096_s0 = scalar_lea.vmem %s53_s21, 4096  ;;  %p1101_p6 = scmp.lt.s32.totalorder %s53_s21, %s53_s21 }
  0x2e   :  { %p1097_p5 = scmp.ne.s32.totalorder %s53_s21, %s1096_s0  ;;  %p1102_p7 = scmp.lt.s32.totalorder %s1096_s0, %s1096_s0 }
  0x30   :  { %p1103_p8 = por %p1102_p7, %p1101_p6 }
  0x32   :  { %p1104_p9 = pnand %p1103_p8, %p1097_p5 }
  0x34   :  { %1107 = shalt.err (!%p1104_p9)
}
  0x35   :  { %58 = dma.hbm_to_vmem [thread:$0]  %s1349_s4, 4096, %s53_s21, [#allocation6], %s1161_s23, %s1161_s23, %s1162_s24  }
  0x36   :  { %s1108_s18 = scalar_lea.hbm %s1352_s7, 2048 }
  0x37   :  { %p1109_p10 = scmp.ne.s32.totalorder %s1352_s7, %s1108_s18  ;;  %p1112_p11 = scmp.lt.u32.totalorder %s1108_s18, %s1352_s7 }
  0x39   :  { %p1114_p12 = pnand %p1112_p11, %p1109_p10 }
  0x3b   :  { %1117 = shalt.err (!%p1114_p12)
}
  0x3c   :  { %s1118_s27 = scalar_lea.vmem %s1256_s25, 2048  ;;  %p1123_p0 = scmp.lt.s32.totalorder %s1256_s25, %s1256_s25 }
  0x3d   :  { %p1119_p13 = scmp.ne.s32.totalorder %s1256_s25, %s1118_s27  ;;  %p1124_p1 = scmp.lt.s32.totalorder %s1118_s27, %s1118_s27 }
  0x3f   :  { %p1125_p2 = por %p1124_p1, %p1123_p0 }
  0x41   :  { %p1126_p3 = pnand %p1125_p2, %p1119_p13 }
  0x43   :  { %1129 = shalt.err (!%p1126_p3)
}
  0x44   :  { %74 = dma.hbm_to_vmem [thread:$0]  %s1352_s7, 2048, %s1256_s25, [#allocation9], %s1164_s1, %s1164_s1, %s1165_s14  }
  0x45   :  { %1152 = dma.done.wait [#allocation3], 128  }
  0x46   :  { %1153 = vsyncadd [#allocation3], 4294967168 }
  0x47   :  { %1154 = dma.done.wait [#allocation6], 5120  }
  0x48   :  { %1155 = vsyncadd [#allocation6], 4294962176 }
  0x49   :  { %1156 = dma.done.wait [#allocation9], 2048  }
  0x4a   :  { %1157 = vsyncadd [#allocation9], 4294965248  ;;  %v1168_v0 = vmov 0   ;;  %v955_v1 = vld [vmem:[#allocation5 + $0x4] ss:$8 sps:$4 sm:$0xff]   ;;  %v967_v9 = vld [vmem:[#allocation2] sm:$0xff]  }
  0x4b   :  { %183 = vmatprep.mubr.bf16.mxu0 %v1168_v0  ;;  %v957_v2 = vld [vmem:[#allocation5] ss:$8 sps:$4 sm:$0xff]   ;;  %151 = vmatprep.subr.bf16.mxu0 %v955_v1  ;;  %v958_v3 = vld [vmem:[#allocation5 + $0x14] ss:$8 sps:$4 sm:$0xff]   ;;  %v960_v4 = vld [vmem:[#allocation5 + $0x10] ss:$8 sps:$4 sm:$0xff]  }
  0x4c   :  { %152 = vmatpush1.bf16.msra.mxu0 %v957_v2  ;;  %v961_v5 = vld [vmem:[#allocation5 + $0x24] ss:$8 sps:$4 sm:$0xff]   ;;  %v963_v6 = vld [vmem:[#allocation5 + $0x20] ss:$8 sps:$4 sm:$0xff]   ;;  %v964_v7 = vld [vmem:[#allocation5 + $0x34] ss:$8 sps:$4 sm:$0xff]  }
  0x4d   :  { %153 = vmatprep.subr.bf16.mxu0 %v958_v3  ;;  %v966_v8 = vld [vmem:[#allocation5 + $0x30] ss:$8 sps:$4 sm:$0xff]   ;;  %vm147_vm0 = vcmask 523264   ;;  %v968_v10 = vld [vmem:[#allocation7 + $0x4] ss:$8 sps:$4 sm:$0xff]   ;;  %s1170_s13 = smov [#allocation10]  }
  0x4e   :  { %v970_v11 = vld [vmem:[#allocation7] ss:$8 sps:$4 sm:$0xff]   ;;  %488 = vmatprep.subr.bf16.mxu1 %v968_v10  ;;  %v971_v12 = vld [vmem:[#allocation7 + $0x14] ss:$8 sps:$4 sm:$0xff]   ;;  %v973_v13 = vld [vmem:[#allocation7 + $0x10] ss:$8 sps:$4 sm:$0xff]  }
  0x4f   :  { %489 = vmatpush1.bf16.msra.mxu1 %v970_v11  ;;  %v974_v14 = vld [vmem:[#allocation7 + $0x24] ss:$8 sps:$4 sm:$0xff]   ;;  %v976_v15 = vld [vmem:[#allocation7 + $0x20] ss:$8 sps:$4 sm:$0xff]   ;;  %v977_v16 = vld [vmem:[#allocation7 + $0x34] ss:$8 sps:$4 sm:$0xff]  }
  0x50   :  { %154 = vmatpush1.bf16.msra.mxu0 %v960_v4  ;;  %490 = vmatprep.subr.bf16.mxu1 %v971_v12  ;;  %v979_v17 = vld [vmem:[#allocation7 + $0x30] ss:$8 sps:$4 sm:$0xff]   ;;  %v980_v18 = vld [vmem:[#allocation7 + $0x44] ss:$8 sps:$4 sm:$0xff]   ;;  %v982_v19 = vld [vmem:[#allocation7 + $0x40] ss:$8 sps:$4 sm:$0xff]  }
  0x51   :  { %155 = vmatprep.subr.bf16.mxu0 %v961_v5  ;;  %v983_v20 = vld [vmem:[#allocation7 + $0x54] ss:$8 sps:$4 sm:$0xff]   ;;  %v985_v21 = vld [vmem:[#allocation7 + $0x50] ss:$8 sps:$4 sm:$0xff]   ;;  %v986_v22 = vld [vmem:[#allocation7 + $0x64] ss:$8 sps:$4 sm:$0xff]  }
  0x52   :  { %v988_v23 = vld [vmem:[#allocation7 + $0x60] ss:$8 sps:$4 sm:$0xff]   ;;  %v989_v24 = vld [vmem:[#allocation7 + $0x74] ss:$8 sps:$4 sm:$0xff]   ;;  %v991_v25 = vld [vmem:[#allocation7 + $0x70] ss:$8 sps:$4 sm:$0xff]  }
  0x53   :  { %491 = vmatpush1.bf16.msra.mxu1 %v973_v13  ;;  %v992_v26 = vld [vmem:[#allocation7 + $0x84] ss:$8 sps:$4 sm:$0xff]   ;;  %v994_v27 = vld [vmem:[#allocation7 + $0x80] ss:$8 sps:$4 sm:$0xff]   ;;  %v995_v28 = vld [vmem:[#allocation7 + $0x94] ss:$8 sps:$4 sm:$0xff]  }
  0x54   :  { %156 = vmatpush1.bf16.msra.mxu0 %v963_v6  ;;  %492 = vmatprep.subr.bf16.mxu1 %v974_v14  ;;  %v997_v29 = vld [vmem:[#allocation7 + $0x90] ss:$8 sps:$4 sm:$0xff]   ;;  %v998_v30 = vld [vmem:[#allocation7 + $0xa4] ss:$8 sps:$4 sm:$0xff]   ;;  %v1000_v31 = vld [vmem:[#allocation7 + $0xa0] ss:$8 sps:$4 sm:$0xff]  }
  0x55   :  { %157 = vmatprep.subr.bf16.mxu0 %v964_v7  ;;  %v1001_v32 = vld [vmem:[#allocation7 + $0xb4] ss:$8 sps:$4 sm:$0xff]   ;;  %v1003_v33 = vld [vmem:[#allocation7 + $0xb0] ss:$8 sps:$4 sm:$0xff]   ;;  %v1004_v34 = vld [vmem:[#allocation7 + $0xc4] ss:$8 sps:$4 sm:$0xff]  }
  0x56   :  { %v1006_v35 = vld [vmem:[#allocation7 + $0xc0] ss:$8 sps:$4 sm:$0xff]   ;;  %v1007_v36 = vld [vmem:[#allocation7 + $0xd4] ss:$8 sps:$4 sm:$0xff]   ;;  %v1009_v37 = vld [vmem:[#allocation7 + $0xd0] ss:$8 sps:$4 sm:$0xff]  }
  0x57   :  { %493 = vmatpush1.bf16.msra.mxu1 %v976_v15  ;;  %v1010_v38 = vld [vmem:[#allocation7 + $0xe4] ss:$8 sps:$4 sm:$0xff]   ;;  %v1012_v39 = vld [vmem:[#allocation7 + $0xe0] ss:$8 sps:$4 sm:$0xff]   ;;  %v1013_v40 = vld [vmem:[#allocation7 + $0xf4] ss:$8 sps:$4 sm:$0xff]  }
  0x58   :  { %158 = vmatpush1.bf16.msra.mxu0 %v966_v8  ;;  %494 = vmatprep.subr.bf16.mxu1 %v977_v16  ;;  %v1015_v41 = vld [vmem:[#allocation7 + $0xf0] ss:$8 sps:$4 sm:$0xff]   ;;  %s849_s0 = sshll.u32 %s1170_s13, 4  ;;  %s850_s0 = int_to_ptr.vmem [resolvable:$true] %s849_s0 }
  0x59   :  { %s1130_s28 = scalar_lea.vmem %s850_s0, 256  ;;  %p1135_p5 = scmp.lt.s32.totalorder %s850_s0, %s850_s0 }
  0x5a   :  { %p1131_p4 = scmp.ne.s32.totalorder %s850_s0, %s1130_s28  ;;  %p1136_p6 = scmp.lt.s32.totalorder %s1130_s28, %s1130_s28 }
  0x5b   :  { %872 = vmatmul.mubr.msk.bf16.vlgmr.msra.gmra.mrb[0].mxu0 %vm147_vm0, %v967_v9  ;;  %495 = vmatpush1.bf16.msra.mxu1 %v979_v17 }
  0x5c   :  { %496 = vmatprep.subr.bf16.mxu1 %v980_v18  ;;  %p1137_p7 = por %p1136_p6, %p1135_p5 }
  0x5e   :  { %p1138_p8 = pnand %p1137_p7, %p1131_p4 }
  0x5f   :  { %497 = vmatpush1.bf16.msra.mxu1 %v982_v19 }
  0x60   :  { %498 = vmatprep.subr.bf16.mxu1 %v983_v20 }
  0x63   :  { %499 = vmatpush1.bf16.msra.mxu1 %v985_v21 }
  0x64   :  { %500 = vmatprep.subr.bf16.mxu1 %v986_v22 }
  0x67   :  { %501 = vmatpush1.bf16.msra.mxu1 %v988_v23 }
  0x68   :  { %502 = vmatprep.subr.bf16.mxu1 %v989_v24  ;;  %v1169_v24 = vmov 1966171168  }
  0x6b   :  { %503 = vmatpush1.bf16.msra.mxu1 %v991_v25  ;;  %v245_v25 = vunpack.c.l.s4 %v1169_v24 }
  0x6c   :  { %504 = vmatprep.subr.bf16.mxu1 %v992_v26  ;;  %v247_v26 = vlaneseq }
  0x6f   :  { %505 = vmatpush1.bf16.msra.mxu1 %v994_v27  ;;  %v246_v27 = vunpack.c.0.s8 %v245_v25 }
  0x70   :  { %506 = vmatprep.subr.bf16.mxu1 %v995_v28  ;;  %v248_v28 = vshrl.u32 %v247_v26, 7 }
  0x73   :  { %507 = vmatpush1.bf16.msra.mxu1 %v997_v29 }
  0x74   :  { %508 = vmatprep.subr.bf16.mxu1 %v998_v30  ;;  %v1293_v30 = vsub.s32 %v246_v27, %v248_v28 }
  0x77   :  { %509 = vmatpush1.bf16.msra.mxu1 %v1000_v31 }
  0x78   :  { %510 = vmatprep.subr.bf16.mxu1 %v1001_v32 }
  0x7b   :  { %511 = vmatpush1.bf16.msra.mxu1 %v1003_v33 }
  0x7c   :  { %512 = vmatprep.subr.bf16.mxu1 %v1004_v34  ;;  %v194_v34 = vld [vmem:[%s1347_s2] sm:$0x3] }
  0x7f   :  { %513 = vmatpush1.bf16.msra.mxu1 %v1006_v35 }
  0x80   :  { %514 = vmatprep.subr.bf16.mxu1 %v1007_v36  ;;  %v1300_v36 = vsub.s32 0, %v248_v28 }
  0x83   :  { %515 = vmatpush1.bf16.msra.mxu1 %v1009_v37  ;;  %v1302_v37 = vsub.s32 1, %v248_v28 }
  0x84   :  { %516 = vmatprep.subr.bf16.mxu1 %v1010_v38  ;;  %v195_v38 = vld [vmem:[%s1348_s3] sm:$0x3] }
  0x87   :  { %517 = vmatpush1.bf16.msra.mxu1 %v1012_v39 }
  0x88   :  { %518 = vmatprep.subr.bf16.mxu1 %v1013_v40 }
  0x8b   :  { %519 = vmatpush1.bf16.msra.mxu1 %v1015_v41 }
 0x12e   :  { %v185_v42 = vpop.f32.mrb[0].mxu0 }
 0x12f   :  { %v187_v43 = vpop.f32.mrb[1].mxu0 }
 0x130   :  { %v189_v44 = vpop.f32.mrb[2].mxu0 }
 0x131   :  { %v196_v45 = vadd.f32 %v189_v44, %v185_v42  ;;  %v191_v46 = vpop.f32.mrb[3].mxu0 }
 0x132   :  { %v203_v47 = vadd.f32 %v191_v46, %v187_v43 }
 0x133   :  { %v197_v48 = vrot.slane %v196_v45, 4 }
 0x134   :  { %v204_v49 = vrot.slane %v203_v47, 4 }
 0x135   :  { %v198_v50 = vadd.f32 %v197_v48, %v196_v45 }
 0x136   :  { %v205_v51 = vadd.f32 %v204_v49, %v203_v47 }
 0x137   :  { %v199_v52 = vrot.slane %v198_v50, 2 }
 0x138   :  { %v206_v53 = vrot.slane %v205_v51, 2 }
 0x139   :  { %v200_v54 = vadd.f32 %v199_v52, %v198_v50 }
 0x13a   :  { %v207_v55 = vadd.f32 %v206_v53, %v205_v51 }
 0x13b   :  { %v201_v56 = vrot.slane %v200_v54, 1 }
 0x13c   :  { %v208_v57 = vrot.slane %v207_v55, 1 }
 0x13d   :  { %v202_v58 = vadd.f32 %v201_v56, %v200_v54 }
 0x13e   :  { %v209_v59 = vadd.f32 %v208_v57, %v207_v55 }
 0x13f   :  { %v211_v60 = vmul.f32 0.0625, %v202_v58  ;;  %v1016_v58 = vld [vmem:[#allocation8 + $0x40] sm:$0xff]  }
 0x140   :  { %v212_v61 = vmul.f32 0.0625, %v209_v59  ;;  %v1017_v59 = vld [vmem:[#allocation8] sm:$0xff]   ;;  %922 = vmatprep.subr.bf16.mxu0 %v1016_v58 }
 0x141   :  { %v213_v62 = vsub.f32 %v185_v42, %v211_v60  ;;  %v215_v63 = vsub.f32 %v189_v44, %v211_v60  ;;  %v279_v42 = vrot.slane %v195_v38, %v1300_v36  ;;  %923 = vmatpush3.bf16.msra.mxu0 %v1017_v59  ;;  %v1018_v60 = vld [vmem:[#allocation8 + $0x48] sm:$0xff]  }
 0x142   :  { %v214_v0 = vsub.f32 %v187_v43, %v212_v61  ;;  %v216_v1 = vsub.f32 %v191_v46, %v212_v61  ;;  %v283_v43 = vrot.slane %v195_v38, %v1302_v37  ;;  %v1019_v61 = vld [vmem:[#allocation8 + $0x8] sm:$0xff]   ;;  %924 = vmatprep.subr.bf16.mxu0 %v1018_v60 }
 0x143   :  { %v217_v2 = vmul.f32 %v213_v62, %v213_v62  ;;  %v219_v3 = vmul.f32 %v215_v63, %v215_v63 }
 0x144   :  { %v218_v4 = vmul.f32 %v214_v0, %v214_v0  ;;  %v220_v5 = vmul.f32 %v216_v1, %v216_v1 }
 0x145   :  { %v221_v6 = vadd.f32 %v219_v3, %v217_v2  ;;  %925 = vmatpush3.bf16.msra.mxu0 %v1019_v61  ;;  %v1024_v2 = vld [vmem:[#allocation8 + $0x60] sm:$0xff]  }
 0x146   :  { %v228_v7 = vadd.f32 %v220_v5, %v218_v4  ;;  %v1025_v3 = vld [vmem:[#allocation8 + $0x20] sm:$0xff]   ;;  %v1026_v4 = vld [vmem:[#allocation8 + $0x68] sm:$0xff]  }
 0x147   :  { %v222_v8 = vrot.slane %v221_v6, 4  ;;  %v1027_v5 = vld [vmem:[#allocation8 + $0x28] sm:$0xff]  }
 0x148   :  { %v229_v9 = vrot.slane %v228_v7, 4 }
 0x149   :  { %v223_v10 = vadd.f32 %v222_v8, %v221_v6  ;;  %v1028_v6 = vld [vmem:[#allocation8 + $0x70] sm:$0xff]   ;;  %v1030_v8 = vld [vmem:[#allocation8 + $0x78] sm:$0xff]  }
 0x14a   :  { %v230_v11 = vadd.f32 %v229_v9, %v228_v7  ;;  %v1029_v7 = vld [vmem:[#allocation8 + $0x30] sm:$0xff]   ;;  %v1031_v9 = vld [vmem:[#allocation8 + $0x38] sm:$0xff]  }
 0x14b   :  { %v224_v12 = vrot.slane %v223_v10, 2 }
 0x14c   :  { %v231_v13 = vrot.slane %v230_v11, 2 }
 0x14d   :  { %v225_v14 = vadd.f32 %v224_v12, %v223_v10 }
 0x14e   :  { %v232_v15 = vadd.f32 %v231_v13, %v230_v11 }
 0x14f   :  { %v226_v16 = vrot.slane %v225_v14, 1 }
 0x150   :  { %v233_v17 = vrot.slane %v232_v15, 1 }
 0x151   :  { %v227_v18 = vadd.f32 %v226_v16, %v225_v14 }
 0x152   :  { %v234_v19 = vadd.f32 %v233_v17, %v232_v15 }
 0x153   :  { %v235_v20 = vmul.f32 0.0625, %v227_v18 }
 0x154   :  { %v236_v21 = vmul.f32 0.0625, %v234_v19 }
 0x155   :  { %v237_v22 = vadd.f32 1e-05, %v235_v20 }
 0x156   :  { %v238_v23 = vadd.f32 1e-05, %v236_v21 }
 0x157   :  { %1032 = vrsqrt.f32 %v237_v22 }
 0x158   :  { %1034 = vrsqrt.f32 %v238_v23 }
 0x161   :  { %v1033_v29 = vpop.eup %1032 }
 0x162   :  { %v1035_v31 = vpop.eup %1034 }
 0x163   :  { %v243_v32 = vcombine.low %v1033_v29, %v1035_v31 }
 0x165   :  { %v250_v33 = vrot.slane %v243_v32, %v1293_v30 }
 0x167   :  { %v257_v35 = vrot.slane %v250_v33, %v1293_v30 }
 0x169   :  { %v259_v39 = vmul.f32 %v257_v35, %v194_v34 }
 0x16b   :  { %v264_v40 = vrot.slane %v259_v39, %v1300_v36  ;;  %v268_v41 = vrot.slane %v259_v39, %v1302_v37 }
 0x16d   :  { %v274_v44 = vmul.f32 %v268_v41, %v216_v1  ;;  %v272_v45 = vmul.f32 %v268_v41, %v214_v0  ;;  %v271_v46 = vmul.f32 %v264_v40, %v213_v62  ;;  %v273_v47 = vmul.f32 %v264_v40, %v215_v63  ;;  %v1020_v62 = vld [vmem:[#allocation8 + $0x50] sm:$0xff]   ;;  %v1022_v0 = vld [vmem:[#allocation8 + $0x58] sm:$0xff]  }
 0x16e   :  { %v1021_v63 = vld [vmem:[#allocation8 + $0x10] sm:$0xff]   ;;  %926 = vmatprep.subr.bf16.mxu0 %v1020_v62  ;;  %v1023_v1 = vld [vmem:[#allocation8 + $0x18] sm:$0xff]  }
 0x16f   :  { %v287_v48 = vadd.f32 %v283_v43, %v272_v45  ;;  %v289_v49 = vadd.f32 %v283_v43, %v274_v44  ;;  %v286_v50 = vadd.f32 %v279_v42, %v271_v46  ;;  %v288_v51 = vadd.f32 %v279_v42, %v273_v47  ;;  %927 = vmatpush3.bf16.msra.mxu0 %v1021_v63  ;;  %v531_v63 = vld [vmem:[%s1350_s5] sm:$0x3] }
 0x170   :  { %928 = vmatprep.subr.bf16.mxu0 %v1022_v0 }
 0x171   :  { %v291_v52 = vmax.f32 %v287_v48, 0.0  ;;  %v293_v53 = vmax.f32 %v289_v49, 0.0  ;;  %v290_v54 = vmax.f32 %v286_v50, 0.0  ;;  %v292_v55 = vmax.f32 %v288_v51, 0.0 }
 0x173   :  { %v295_v56 = vpack.c.bf16 %v293_v53, %v291_v52  ;;  %v294_v57 = vpack.c.bf16 %v292_v55, %v290_v54  ;;  %929 = vmatpush3.bf16.msra.mxu0 %v1023_v1  ;;  %v532_v1 = vld [vmem:[%s1351_s6] sm:$0x3] }
 0x174   :  { %930 = vmatprep.subr.bf16.mxu0 %v1024_v2 }
 0x175   :  { %520 = vmatprep.mubr.bf16.mxu1 %v295_v56 }
 0x176   :  { %521 = vmatmul.mubr.bf16.vlgmr.msra.gmra.mrb[0].mxu1 %v294_v57 }
 0x177   :  { %931 = vmatpush3.bf16.msra.mxu0 %v1025_v3 }
 0x178   :  { %932 = vmatprep.subr.bf16.mxu0 %v1026_v4 }
 0x17b   :  { %933 = vmatpush3.bf16.msra.mxu0 %v1027_v5  ;;  %v615_v5 = vrot.slane %v532_v1, %v1300_v36 }
 0x17c   :  { %934 = vmatprep.subr.bf16.mxu0 %v1028_v6  ;;  %v619_v6 = vrot.slane %v532_v1, %v1302_v37 }
 0x17f   :  { %935 = vmatpush3.bf16.msra.mxu0 %v1029_v7 }
 0x180   :  { %936 = vmatprep.subr.bf16.mxu0 %v1030_v8 }
 0x183   :  { %937 = vmatpush3.bf16.msra.mxu0 %v1031_v9 }
 0x249   :  { %v522_v10 = vpop.f32.mrb[0].mxu1 }
 0x24a   :  { %v524_v11 = vpop.f32.mrb[1].mxu1 }
 0x24b   :  { %v526_v12 = vpop.f32.mrb[2].mxu1 }
 0x24c   :  { %v533_v13 = vadd.f32 %v526_v12, %v522_v10  ;;  %v528_v14 = vpop.f32.mrb[3].mxu1 }
 0x24d   :  { %v540_v15 = vadd.f32 %v528_v14, %v524_v11 }
 0x24e   :  { %v534_v16 = vrot.slane %v533_v13, 4 }
 0x24f   :  { %v541_v17 = vrot.slane %v540_v15, 4 }
 0x250   :  { %v535_v18 = vadd.f32 %v534_v16, %v533_v13 }
 0x251   :  { %v542_v19 = vadd.f32 %v541_v17, %v540_v15 }
 0x252   :  { %v536_v20 = vrot.slane %v535_v18, 2 }
 0x253   :  { %v543_v21 = vrot.slane %v542_v19, 2 }
 0x254   :  { %v537_v22 = vadd.f32 %v536_v20, %v535_v18 }
 0x255   :  { %v544_v23 = vadd.f32 %v543_v21, %v542_v19 }
 0x256   :  { %v538_v24 = vrot.slane %v537_v22, 1 }
 0x257   :  { %v545_v25 = vrot.slane %v544_v23, 1 }
 0x258   :  { %v539_v26 = vadd.f32 %v538_v24, %v537_v22 }
 0x259   :  { %v546_v27 = vadd.f32 %v545_v25, %v544_v23 }
 0x25a   :  { %v547_v28 = vmul.f32 0.0625, %v539_v26 }
 0x25b   :  { %v548_v29 = vmul.f32 0.0625, %v546_v27 }
 0x25c   :  { %v549_v31 = vsub.f32 %v522_v10, %v547_v28  ;;  %v551_v32 = vsub.f32 %v526_v12, %v547_v28 }
 0x25d   :  { %v550_v33 = vsub.f32 %v524_v11, %v548_v29  ;;  %v552_v34 = vsub.f32 %v528_v14, %v548_v29 }
 0x25e   :  { %v553_v35 = vmul.f32 %v549_v31, %v549_v31  ;;  %v555_v38 = vmul.f32 %v551_v32, %v551_v32 }
 0x25f   :  { %v554_v39 = vmul.f32 %v550_v33, %v550_v33  ;;  %v556_v40 = vmul.f32 %v552_v34, %v552_v34 }
 0x260   :  { %v557_v41 = vadd.f32 %v555_v38, %v553_v35 }
 0x261   :  { %v564_v42 = vadd.f32 %v556_v40, %v554_v39 }
 0x262   :  { %v558_v43 = vrot.slane %v557_v41, 4 }
 0x263   :  { %v565_v44 = vrot.slane %v564_v42, 4 }
 0x264   :  { %v559_v45 = vadd.f32 %v558_v43, %v557_v41 }
 0x265   :  { %v566_v46 = vadd.f32 %v565_v44, %v564_v42 }
 0x266   :  { %v560_v47 = vrot.slane %v559_v45, 2 }
 0x267   :  { %v567_v48 = vrot.slane %v566_v46, 2 }
 0x268   :  { %v561_v49 = vadd.f32 %v560_v47, %v559_v45 }
 0x269   :  { %v568_v50 = vadd.f32 %v567_v48, %v566_v46 }
 0x26a   :  { %v562_v51 = vrot.slane %v561_v49, 1 }
 0x26b   :  { %v569_v52 = vrot.slane %v568_v50, 1 }
 0x26c   :  { %v563_v53 = vadd.f32 %v562_v51, %v561_v49  ;;  %v801_v49 = vld [vmem:[%s1353_s8] sm:$0x1] }
 0x26d   :  { %v570_v54 = vadd.f32 %v569_v52, %v568_v50 }
 0x26e   :  { %v571_v55 = vmul.f32 0.0625, %v563_v53  ;;  %v921_v53 = vld [vmem:[%s1354_s9] ss:$0 sm:$0xff] }
 0x26f   :  { %v572_v56 = vmul.f32 0.0625, %v570_v54 }
 0x270   :  { %v573_v57 = vadd.f32 1e-05, %v571_v55 }
 0x271   :  { %v574_v58 = vadd.f32 1e-05, %v572_v56 }
 0x272   :  { %1036 = vrsqrt.f32 %v573_v57 }
 0x273   :  { %1038 = vrsqrt.f32 %v574_v58 }
 0x27c   :  { %v1037_v59 = vpop.eup %1036 }
 0x27d   :  { %v1039_v60 = vpop.eup %1038 }
 0x27e   :  { %v579_v61 = vcombine.low %v1037_v59, %v1039_v60 }
 0x280   :  { %v586_v62 = vrot.slane %v579_v61, %v1293_v30 }
 0x282   :  { %v593_v0 = vrot.slane %v586_v62, %v1293_v30 }
 0x284   :  { %v595_v2 = vmul.f32 %v593_v0, %v531_v63 }
 0x286   :  { %v600_v3 = vrot.slane %v595_v2, %v1300_v36  ;;  %v604_v4 = vrot.slane %v595_v2, %v1302_v37 }
 0x288   :  { %v607_v7 = vmul.f32 %v600_v3, %v549_v31  ;;  %v608_v8 = vmul.f32 %v604_v4, %v550_v33  ;;  %v609_v9 = vmul.f32 %v600_v3, %v551_v32  ;;  %v610_v10 = vmul.f32 %v604_v4, %v552_v34 }
 0x28a   :  { %v625_v11 = vadd.f32 %v619_v6, %v610_v10  ;;  %v623_v12 = vadd.f32 %v619_v6, %v608_v8  ;;  %v622_v30 = vadd.f32 %v615_v5, %v607_v7  ;;  %v624_v13 = vadd.f32 %v615_v5, %v609_v9 }
 0x28c   :  { %v629_v14 = vmax.f32 %v625_v11, 0.0  ;;  %v627_v15 = vmax.f32 %v623_v12, 0.0  ;;  %v626_v16 = vmax.f32 %v622_v30, 0.0  ;;  %v628_v17 = vmax.f32 %v624_v13, 0.0 }
 0x28e   :  { %v631_v18 = vpack.c.bf16 %v629_v14, %v627_v15  ;;  %v630_v19 = vpack.c.bf16 %v628_v17, %v626_v16 }
 0x290   :  { %792 = vmatprep.mubr.bf16.mxu0 %v631_v18 }
 0x291   :  { %793 = vmatmul.mubr.bf16.vlgmr.msra.gmra.mrb[4].mxu0 %v630_v19 }
 0x364   :  { %v938_v20 = vpop.f32.mrb[4].mxu0 }
 0x365   :  { %v939_v21 = vpop.f32.mrb[5].mxu0 }
 0x366   :  { %v940_v22 = vadd.f32 %v939_v21, %v938_v20  ;;  %v941_v37 = vpop.f32.mrb[6].mxu0 }
 0x367   :  { %v942_v23 = vpop.f32.mrb[7].mxu0 }
 0x368   :  { %v943_v24 = vadd.f32 %v942_v23, %v941_v37 }
 0x36a   :  { %v803_v25 = vadd.f32 %v943_v24, %v940_v22 }
 0x36c   :  { %v804_v26 = vrot.slane %v803_v25, 4 }
 0x36e   :  { %v805_v27 = vadd.f32 %v804_v26, %v803_v25 }
 0x370   :  { %v806_v28 = vrot.slane %v805_v27, 2 }
 0x372   :  { %v807_v29 = vadd.f32 %v806_v28, %v805_v27 }
 0x374   :  { %v808_v31 = vrot.slane %v807_v29, 1 }
 0x376   :  { %v809_v32 = vadd.f32 %v808_v31, %v807_v29 }
 0x378   :  { %v810_v33 = vmul.f32 0.0625, %v809_v32 }
 0x37a   :  { %v811_v34 = vsub.f32 %v940_v22, %v810_v33  ;;  %v812_v35 = vsub.f32 %v943_v24, %v810_v33 }
 0x37c   :  { %v813_v38 = vmul.f32 %v811_v34, %v811_v34  ;;  %v814_v39 = vmul.f32 %v812_v35, %v812_v35 }
 0x37e   :  { %v815_v40 = vadd.f32 %v814_v39, %v813_v38 }
 0x380   :  { %v816_v41 = vrot.slane %v815_v40, 4 }
 0x382   :  { %v817_v42 = vadd.f32 %v816_v41, %v815_v40 }
 0x384   :  { %v818_v43 = vrot.slane %v817_v42, 2 }
 0x386   :  { %v819_v44 = vadd.f32 %v818_v43, %v817_v42 }
 0x388   :  { %v820_v45 = vrot.slane %v819_v44, 1 }
 0x38a   :  { %v821_v46 = vadd.f32 %v820_v45, %v819_v44 }
 0x38c   :  { %v822_v47 = vmul.f32 0.0625, %v821_v46 }
 0x38e   :  { %v823_v48 = vadd.f32 1e-05, %v822_v47 }
 0x390   :  { %1040 = vrsqrt.f32 %v823_v48 }
 0x39a   :  { %v1041_v50 = vpop.eup %1040 }
 0x39b   :  { %v825_v51 = vmul.f32 %v1041_v50, %v801_v49 }
 0x39d   :  { %v830_v52 = vrot.slane %v825_v51, %v1300_v36 }
 0x39f   :  { %v833_v54 = vmul.f32 %v830_v52, %v812_v35  ;;  %v832_v55 = vmul.f32 %v830_v52, %v811_v34 }
 0x3a1   :  { %v840_v56 = vadd.f32 %v921_v53, %v832_v55  ;;  %v841_v57 = vadd.f32 %v921_v53, %v833_v54 }
 0x3a3   :  { %842 = vst [vmem:[#allocation10] sm:$0xff] %v840_v56  ;;  %843 = vst [vmem:[#allocation10 + $0x8] sm:$0xff] %v841_v57 }
 0x3a4   :  { %1141 = shalt.err (!%p1138_p8)
}
 0x3a5   :  { %s1142_s9 = scalar_lea.hbm %s1355_s10, 256 }
 0x3a6   :  { %p1143_p9 = scmp.ne.s32.totalorder %s1355_s10, %s1142_s9  ;;  %p1146_p10 = scmp.lt.u32.totalorder %s1142_s9, %s1355_s10 }
 0x3a8   :  { %p1148_p11 = pnand %p1146_p10, %p1143_p9 }
 0x3aa   :  { %1151 = shalt.err (!%p1148_p11)
}
 0x3ab   :  { %855 = dma.vmem_to_hbm [thread:$0]  %s850_s0, 256, %s1355_s10, [#allocation4], %s1161_s23, %s1161_s23, %s1162_s24  }
 0x3ac   :  { %1158 = dma.done.wait [#allocation4], 256  }
 0x3ad   :  { %1159 = vsyncadd [#allocation4], 4294967040 }
 0x3ae   :  { %859 = vsyncpa [#allocation3], 1 }
 0x3af   :  { %860 = vsyncpa [#allocation6], 1 }
 0x3b0   :  { %861 = vsyncpa [#allocation9], 1 }
 0x3b1   :  { %862 = vsyncpa [#allocation4], 1 }

</bundles_post_ra>
